<compile_context>
chip_gen: v6e
topology: v6e:2x2x1
jax: 0.10.0
libtpu: 0.0.40
codegen_flags: <defaults>
</compile_context>

<pallas_src>
import jax
import jax.numpy as jnp
from jax.experimental import pallas as pl
from jax.experimental.pallas import tpu as pltpu

BN_EPS = 1e-5

_VMEM_LIMIT = None


def _vmem_limit():
    """Generation-aware scoped-VMEM request (v7x has only 64 MiB physical per core)."""
    global _VMEM_LIMIT
    if _VMEM_LIMIT is None:
        cap = 128 << 20
        try:
            cap = int(pltpu.get_tpu_info().vmem_capacity_bytes)
        except Exception:
            pass
        _VMEM_LIMIT = max(16 << 20, min(48 << 20, (cap * 3) // 4))
    return _VMEM_LIMIT


def _pick_tile(n, cap):
    """Largest divisor of n that is <= cap, preferring multiples of 8 (sublane-aligned)."""
    if n <= cap:
        return n
    for d in range(cap, 0, -1):
        if n % d == 0 and d % 8 == 0:
            return d
    for d in range(cap, 0, -1):
        if n % d == 0:
            return d
    return n


# ----------------------------------------------------------------------------
# Pallas kernels
# ----------------------------------------------------------------------------
def _matmul_bias_kernel(relu, has_res):
    """out = [relu]( x @ w + shift [+ residual] ) -- bf16 operands, fp32 accumulate."""
    def kernel(*refs):
        if has_res:
            x_ref, w_ref, s_ref, r_ref, o_ref = refs
        else:
            x_ref, w_ref, s_ref, o_ref = refs
        acc = jnp.dot(x_ref[...], w_ref[...], preferred_element_type=jnp.float32)
        acc = acc + s_ref[...]
        if has_res:
            acc = acc + r_ref[...].astype(jnp.float32)
        if relu:
            acc = jnp.maximum(acc, 0.0)
        o_ref[...] = acc.astype(o_ref.dtype)
    return kernel


def _conv3x3_s1_kernel(cin, wp):
    """Direct 3x3 / stride-1 conv: accumulate 9 shifted matmuls over the flattened
    padded image (no HBM im2col). Always followed by ReLU (bottleneck conv2)."""
    def kernel(x_ref, w_ref, s_ref, o_ref):
        mc, tn = o_ref.shape[1], o_ref.shape[2]
        acc = jnp.zeros((mc, tn), jnp.float32)
        for k in range(9):
            di, dj = divmod(k, 3)
            off = di * wp + dj
            lhs = x_ref[0, off:off + mc, :]                         # (mc, cin) bf16
            acc = acc + jnp.dot(lhs, w_ref[k * cin:(k + 1) * cin, :],
                                preferred_element_type=jnp.float32)
        acc = jnp.maximum(acc + s_ref[...], 0.0)
        o_ref[0, :, :] = acc.astype(o_ref.dtype)
    return kernel


def _maxpool_kernel(x_ref, o_ref):
    # x_ref: (9, tm, C) -- the 9 shifted 3x3 window views; reduce over the window axis.
    o_ref[...] = jnp.max(x_ref[...], axis=0)


def _classifier_kernel(f_ref, w_ref, b_ref, o_ref):
    # Global average pool (fp32) + linear (bf16 MXU, fp32 acc) + softmax (fp32).
    pooled = jnp.mean(f_ref[...].astype(jnp.float32), axis=1)           # (N, C)
    logits = jnp.dot(pooled.astype(jnp.bfloat16), w_ref[...],
                     preferred_element_type=jnp.float32) + b_ref[...]   # (N, classes)
    m = jnp.max(logits, axis=-1, keepdims=True)
    e = jnp.exp(logits - m)
    o_ref[...] = e / jnp.sum(e, axis=-1, keepdims=True)


# ----------------------------------------------------------------------------
# Pallas wrappers
# ----------------------------------------------------------------------------
def fused_matmul(x2d, w_mat, shift, residual=None, relu=True):
    m, k = x2d.shape
    _, n = w_mat.shape
    tm = _pick_tile(m, 512)
    tn = _pick_tile(n, 256)
    grid = (n // tn, m // tm)        # Cout tiles outer, M tiles inner -> weight stays resident
    in_specs = [pl.BlockSpec((tm, k), lambda j, i: (i, 0)),
                pl.BlockSpec((k, tn), lambda j, i: (0, j)),
                pl.BlockSpec((1, tn), lambda j, i: (0, j))]
    args = [x2d, w_mat, shift]
    if residual is not None:
        in_specs.append(pl.BlockSpec((tm, tn), lambda j, i: (i, j)))
        args.append(residual)
    return pl.pallas_call(
        _matmul_bias_kernel(relu, residual is not None),
        out_shape=jax.ShapeDtypeStruct((m, n), jnp.bfloat16),
        grid=grid,
        in_specs=in_specs,
        out_specs=pl.BlockSpec((tm, tn), lambda j, i: (i, j)),
        compiler_params=pltpu.CompilerParams(
            dimension_semantics=("parallel", "parallel"),
            vmem_limit_bytes=_vmem_limit()),
    )(*args)


def conv1x1(x_nhwc, cp, relu=True, residual=None, stride=1):
    """1x1 conv + folded BN [+ residual] [+ ReLU]: no im2col, just a reshaped matmul."""
    if stride != 1:
        x_nhwc = x_nhwc[:, ::stride, ::stride, :]
    n, h, w, c = x_nhwc.shape
    cout = cp["cout"]
    x2d = x_nhwc.reshape(n * h * w, c)
    res2d = None if residual is None else residual.reshape(n * h * w, cout)
    out = fused_matmul(x2d, cp["w_mat"], cp["shift"], residual=res2d, relu=relu)
    return out.reshape(n, h, w, cout)


def conv3x3_s1(x_nhwc, cp):
    """3x3 / stride-1 / pad-1 conv + folded BN + ReLU, without materializing im2col in HBM.

    The padded image is flattened to (L, Cin); every window offset (di, dj) is then a
    contiguous row-shift by di*(W+2)+dj. Output is computed at full padded width W+2 (the
    2 wrap columns per row are garbage) and sliced back to W afterwards."""
    n, h, w, c = x_nhwc.shape
    wp = w + 2
    # Extra bottom pad row keeps the last full-width output rows' windows in bounds.
    xp = jnp.pad(x_nhwc, ((0, 0), (1, 2), (1, 1), (0, 0)))
    l = (h + 3) * wp
    x_flat = xp.reshape(n, l, c)
    cout = cp["cout"]
    mc = h * wp
    tn = _pick_tile(cout, 256)
    out = pl.pallas_call(
        _conv3x3_s1_kernel(c, wp),
        out_shape=jax.ShapeDtypeStruct((n, mc, cout), jnp.bfloat16),
        grid=(cout // tn, n),          # weight tile outer, batch inner -> weight resident
        in_specs=[pl.BlockSpec((1, l, c), lambda j, b: (b, 0, 0)),
                  pl.BlockSpec((9 * c, tn), lambda j, b: (0, j)),
                  pl.BlockSpec((1, tn), lambda j, b: (0, j))],
        out_specs=pl.BlockSpec((1, mc, tn), lambda j, b: (b, 0, j)),
        compiler_params=pltpu.CompilerParams(
            dimension_semantics=("parallel", "parallel"),
            vmem_limit_bytes=_vmem_limit()),
    )(x_flat, cp["w_mat"], cp["shift"])
    return out.reshape(n, h, wp, cout)[:, :, :w, :]


def conv_im2col(x_nhwc, cp, stride, relu=True):
    """Strided convs (7x7 stem, stride-2 3x3): small bf16 im2col + fused matmul."""
    kh, kw, cin, cout = cp["kh"], cp["kw"], cp["cin"], cp["cout"]
    pad = (kh - 1) // 2
    n, h, w, _ = x_nhwc.shape
    xp = jnp.pad(x_nhwc, ((0, 0), (pad, pad), (pad, pad), (0, 0)))
    ho = (h + 2 * pad - kh) // stride + 1
    wo = (w + 2 * pad - kw) // stride + 1
    cols = []
    for di in range(kh):
        for dj in range(kw):
            cols.append(xp[:, di:di + stride * (ho - 1) + 1:stride,
                              dj:dj + stride * (wo - 1) + 1:stride, :])
    patches = jnp.concatenate(cols, axis=-1).reshape(n * ho * wo, kh * kw * cin)
    out = fused_matmul(patches, cp["w_mat"], cp["shift"], relu=relu)
    return out.reshape(n, ho, wo, cout)


def maxpool_3x3_s2(x_nhwc):
    n, h, w, c = x_nhwc.shape
    xp = jnp.pad(x_nhwc, ((0, 0), (1, 1), (1, 1), (0, 0)), constant_values=-jnp.inf)
    ho = (h + 2 - 3) // 2 + 1
    wo = (w + 2 - 3) // 2 + 1
    views = [xp[:, di:di + 2 * (ho - 1) + 1:2, dj:dj + 2 * (wo - 1) + 1:2, :]
             for di in range(3) for dj in range(3)]
    stacked = jnp.stack(views, axis=0).reshape(9, n * ho * wo, c)
    m = n * ho * wo
    tm = _pick_tile(m, 512)
    out = pl.pallas_call(
        _maxpool_kernel,
        out_shape=jax.ShapeDtypeStruct((m, c), x_nhwc.dtype),
        grid=(m // tm,),
        in_specs=[pl.BlockSpec((9, tm, c), lambda i: (0, i, 0))],
        out_specs=pl.BlockSpec((tm, c), lambda i: (i, 0)),
        compiler_params=pltpu.CompilerParams(
            dimension_semantics=("parallel",),
            vmem_limit_bytes=_vmem_limit()),
    )(stacked)
    return out.reshape(n, ho, wo, c)


def classifier_softmax(feat_nhwc, w_fc_mat, b_fc):
    # TODO(synk): nn.Dropout is identity in eval mode; stochastic train-mode dropout omitted.
    n, h, w, c = feat_nhwc.shape
    feats = feat_nhwc.reshape(n, h * w, c)
    nc = w_fc_mat.shape[1]
    return pl.pallas_call(
        _classifier_kernel,
        out_shape=jax.ShapeDtypeStruct((n, nc), jnp.float32),
        grid=(1,),
        in_specs=[pl.BlockSpec((n, h * w, c), lambda i: (0, 0, 0)),
                  pl.BlockSpec((c, nc), lambda i: (0, 0)),
                  pl.BlockSpec((1, nc), lambda i: (0, 0))],
        out_specs=pl.BlockSpec((n, nc), lambda i: (0, 0)),
        compiler_params=pltpu.CompilerParams(vmem_limit_bytes=_vmem_limit()),
    )(feats, w_fc_mat, b_fc)


# ----------------------------------------------------------------------------
# ResNet50 structure (torchvision layout) + deterministic synthetic params
# ----------------------------------------------------------------------------
_RESNET50_CFG = [(64, 3, 1), (128, 4, 2), (256, 6, 2), (512, 3, 2)]  # (planes, blocks, stride)
_EXPANSION = 4


def _init_conv_bn(key, cin, cout, k):
    w = jax.random.normal(key, (cout, cin, k, k), jnp.float32) * (2.0 / (cin * k * k)) ** 0.5
    return dict(w=w,
                gamma=jnp.ones((cout,), jnp.float32),
                beta=jnp.zeros((cout,), jnp.float32),
                mean=jnp.zeros((cout,), jnp.float32),
                var=jnp.ones((cout,), jnp.float32))


def init_params(key, num_classes):
    keys = iter(jax.random.split(key, 64))
    params = {"stem": _init_conv_bn(next(keys), 3, 64, 7)}
    layers = []
    in_ch = 64
    for planes, blocks, stride in _RESNET50_CFG:
        blks = []
        for b in range(blocks):
            s = stride if b == 0 else 1
            blk = {
                "stride": s,
                "conv1": _init_conv_bn(next(keys), in_ch, planes, 1),
                "conv2": _init_conv_bn(next(keys), planes, planes, 3),
                "conv3": _init_conv_bn(next(keys), planes, planes * _EXPANSION, 1),
            }
            if s != 1 or in_ch != planes * _EXPANSION:
                blk["down"] = _init_conv_bn(next(keys), in_ch, planes * _EXPANSION, 1)
            blks.append(blk)
            in_ch = planes * _EXPANSION
        layers.append(blks)
    params["layers"] = layers
    kw, kb = next(keys), next(keys)
    bound = 1.0 / (2048 ** 0.5)
    params["fc_w"] = jax.random.uniform(kw, (num_classes, 2048), jnp.float32, -bound, bound)
    params["fc_b"] = jax.random.uniform(kb, (num_classes,), jnp.float32, -bound, bound)
    return params


def _prep_conv_bn(p):
    """Fold eval-mode BN scale into the conv weight (once), reshape to (K, Cout), cast bf16."""
    w = p["w"]                                   # (Cout, Cin, kh, kw) PyTorch OIHW
    cout, cin, kh, kw = w.shape
    scale = p["gamma"] / jnp.sqrt(p["var"] + BN_EPS)
    shift = p["beta"] - p["mean"] * scale
    w_mat = (jnp.transpose(w, (2, 3, 1, 0)) * scale).reshape(kh * kw * cin, cout)
    return dict(w_mat=w_mat.astype(jnp.bfloat16),
                shift=shift.reshape(1, cout).astype(jnp.float32),
                kh=kh, kw=kw, cin=cin, cout=cout)


def prepare_params(params):
    prep = {"stem": _prep_conv_bn(params["stem"]), "layers": []}
    for layer in params["layers"]:
        blks = []
        for blk in layer:
            pb = {"stride": blk["stride"],
                  "conv1": _prep_conv_bn(blk["conv1"]),
                  "conv2": _prep_conv_bn(blk["conv2"]),
                  "conv3": _prep_conv_bn(blk["conv3"])}
            if "down" in blk:
                pb["down"] = _prep_conv_bn(blk["down"])
            blks.append(pb)
        prep["layers"].append(blks)
    prep["fc_w_mat"] = params["fc_w"].T.astype(jnp.bfloat16)        # (2048, classes)
    prep["fc_b"] = params["fc_b"].reshape(1, -1).astype(jnp.float32)
    return prep


def bottleneck(x, p):
    identity = x
    out = conv1x1(x, p["conv1"], relu=True)
    if p["stride"] == 1:
        out = conv3x3_s1(out, p["conv2"])                           # direct conv, no im2col
    else:
        out = conv_im2col(out, p["conv2"], stride=p["stride"], relu=True)
    if "down" in p:
        identity = conv1x1(x, p["down"], relu=False, stride=p["stride"])
    # bn(conv3) + identity, then ReLU — fused in the matmul kernel.
    return conv1x1(out, p["conv3"], relu=True, residual=identity)


def mri_resnet_classifier_forward(prep, x_nchw):
    """Matches MRIResNetClassifier.forward in eval mode. Input is NCHW (PyTorch)."""
    x = jnp.transpose(x_nchw, (0, 2, 3, 1)).astype(jnp.bfloat16)    # -> NHWC, bf16
    x = conv_im2col(x, prep["stem"], stride=2, relu=True)           # conv1 + bn1 + relu
    x = maxpool_3x3_s2(x)                                           # maxpool 3x3/2 pad 1
    for layer in prep["layers"]:
        for blk in layer:
            x = bottleneck(x, blk)
    # AdaptiveAvgPool2d(1) + flatten + Dropout(eval: identity) + Linear + softmax(dim=1)
    return classifier_softmax(x, prep["fc_w_mat"], prep["fc_b"])


# ----------------------------------------------------------------------------
if __name__ == "__main__":
    key = jax.random.PRNGKey(0)
    k_param, k_x = jax.random.split(key)

    num_classes = 4
    params = init_params(k_param, num_classes)
    prep = prepare_params(params)

    # NCHW input, 3 channels as required by the ResNet50 stem; 64x64 spatial keeps every
    # stage non-degenerate (final feature map is 2x2x2048).
    x = jax.random.normal(k_x, (2, 3, 64, 64), jnp.float32)

    out = mri_resnet_classifier_forward(prep, x)
    out = jax.block_until_ready(out)

    assert out.shape == (2, num_classes)
    assert bool(jnp.all(jnp.abs(jnp.sum(out, axis=1) - 1.0) < 1e-4))
    print("KERNEL_OK")
</pallas_src>

<mosaic_0001>
module attributes {stable_mosaic.version = 11 : i64} {
  func.func @kernel(%arg0: i32, %arg1: i32, %arg2: memref<512x147xbf16, #tpu.memory_space<vmem>>, %arg3: memref<147x64xbf16, #tpu.memory_space<vmem>>, %arg4: memref<1x64xf32, #tpu.memory_space<vmem>>, %arg5: memref<512x64xbf16, #tpu.memory_space<vmem>>) attributes {dimension_semantics = [#tpu.dimension_semantics<parallel>, #tpu.dimension_semantics<parallel>], iteration_bounds = array<i64: 1, 4>, scalar_prefetch = 0 : i64, scratch_operands = 0 : i64, tpu.core_type = #tpu.core_type<tc>, window_params = [{transform_indices = @transform_0, window_bounds = array<i64: 512, 147>}, {transform_indices = @transform_1, window_bounds = array<i64: 147, 64>}, {transform_indices = @transform_2, window_bounds = array<i64: 1, 64>}, {transform_indices = @transform_3, window_bounds = array<i64: 512, 64>}]} {
    %c0 = arith.constant 0 : index
    %c0_0 = arith.constant 0 : index
    %0 = vector.load %arg2[%c0, %c0_0] : memref<512x147xbf16, #tpu.memory_space<vmem>>, vector<512x147xbf16>
    %c0_1 = arith.constant 0 : index
    %c0_2 = arith.constant 0 : index
    %1 = vector.load %arg3[%c0_1, %c0_2] : memref<147x64xbf16, #tpu.memory_space<vmem>>, vector<147x64xbf16>
    %cst = arith.constant dense<0.000000e+00> : vector<512x64xf32>
    %2 = tpu.matmul %0, %1, %cst {dimension_numbers = #tpu.dot_dimension_numbers<[1], [0], [0], [1], [0, 0, 1, 1], [], []>} : vector<512x147xbf16>, vector<147x64xbf16>, vector<512x64xf32> -> vector<512x64xf32>
    %c0_3 = arith.constant 0 : index
    %c0_4 = arith.constant 0 : index
    %3 = vector.load %arg4[%c0_3, %c0_4] : memref<1x64xf32, #tpu.memory_space<vmem>>, vector<1x64xf32>
    %4 = vector.broadcast %3 : vector<1x64xf32> to vector<512x64xf32>
    %5 = arith.addf %2, %4 : vector<512x64xf32>
    %cst_5 = arith.constant 0.000000e+00 : f32
    %6 = vector.broadcast %cst_5 : f32 to vector<512x64xf32>
    %7 = arith.maximumf %5, %6 : vector<512x64xf32>
    %8 = arith.truncf %7 : vector<512x64xf32> to vector<512x64xbf16>
    %c0_6 = arith.constant 0 : index
    %c0_7 = arith.constant 0 : index
    %9 = vector.load %arg5[%c0_6, %c0_7] : memref<512x64xbf16, #tpu.memory_space<vmem>>, vector<512x64xbf16>
    tpu.vector_store %arg5[%c0_6, %c0_7], %8 {strides = array<i32>} : memref<512x64xbf16, #tpu.memory_space<vmem>>, vector<512x64xbf16>,
    return
  }
  func.func @transform_0(%arg0: i32, %arg1: i32) -> (i32, i32) {
    %c0_i32 = arith.constant 0 : i32
    %c0_i32_0 = arith.constant 0 : i32
    return %arg1, %c0_i32 : i32, i32
  }
  func.func @transform_1(%arg0: i32, %arg1: i32) -> (i32, i32) {
    %c0_i32 = arith.constant 0 : i32
    %c0_i32_0 = arith.constant 0 : i32
    return %c0_i32, %arg0 : i32, i32
  }
  func.func @transform_2(%arg0: i32, %arg1: i32) -> (i32, i32) {
    %c0_i32 = arith.constant 0 : i32
    %c0_i32_0 = arith.constant 0 : i32
    return %c0_i32, %arg0 : i32, i32
  }
  func.func @transform_3(%arg0: i32, %arg1: i32) -> (i32, i32) {
    %c0_i32 = arith.constant 0 : i32
    return %arg1, %arg0 : i32, i32
  }
}

</mosaic_0001>

<bundles_post_ra>
// kernel: tpu_custom_call.1
= control target key start
LH: loop header
LB: loop body
LE: loop exit
PB: predicated region body
PF: predicated region fallthrough
CT: control target
= control target key end

     0   :  { %s1992_s12 = smov 0   ;;  %s1994_s13 = smov 0   ;;  %s2356_s0 = inlined_call_operand.vmem [shape: bf16[2048,147], index: 0, kind: input, shape index: {}]   ;;  %s2357_s1 = inlined_call_operand.vmem [shape: bf16[147,64], index: 1, kind: input, shape index: {}]   ;;  %s2358_s2 = inlined_call_operand.vmem [shape: f32[1,64], index: 2, kind: input, shape index: {}]   ;;  %s2359_s3 = inlined_call_operand.vmem [shape: bf16[2048,64], index: 3, kind: output, shape index: {}]  }
   0x1   :  { %s1996_s14 = smov 0  }
   0x2 LB: > { %s22_s15 = sadd.s32 1, %s1964_s13  ;;  %p1550_p0 = scmp.ge.s32.totalorder %s1968_s14, 1  ;;  %s1968_s14 = sphi %s1996_s14, %s13_s14   ;;  %s1964_s13 = sphi %s1994_s13, %s2361_s13   ;;  %s1960_s12 = sphi %s1992_s12, %s2360_s12  }
   0x3   : > { %p23_p1 = scmp.ge.s32.totalorder %s22_s15, 4  ;;  %p170_p2 = scmp.lt.s32.totalorder %s1968_s14, 5 }
   0x5   : > { %s2363_s15 = smov (%p23_p1, %s22_s15), 0  ;;  %p171_p3 = pnand %p1550_p0, %p170_p2 }
   0x6   : > { %s1551_s22 = sshll.u32 (!%p171_p3), %s1960_s12, 6 }
   0x7   : > { %174 = sbr.rel (%p171_p3) target bundleno = 377 (0x179), region = 32  ;;  %p206_p4 = scmp.lt.s32.totalorder (!%p171_p3), %s1551_s22, 255 }
   0xc   : > { %v1840_v0 = vld [vmem:[%s2357_s1 + $0x38] sm:$0xff]   ;;  %v1970_v1 = vmov 0   ;;  %v1841_v2 = vld [vmem:[%s2357_s1 + $0x30] sm:$0xff]   ;;  %v1842_v3 = vld [vmem:[%s2357_s1 + $0x28] sm:$0xff]   ;;  %s2365_s22 = smov (!%p206_p4, %s1551_s22), 255  ;;  %vm664_vm0 = vcmask 154624  }
   0xd   : > { %768 = vmatprep.subr.bf16.mxu0 %v1970_v1  ;;  %1794 = vmatprep.subr.bf16.mxu1 %v1970_v1  ;;  %v1843_v4 = vld [vmem:[%s2357_s1 + $0x20] sm:$0xff]   ;;  %s1729_s25 = sshll.u32 %s2365_s22, 3  ;;  %v1844_v5 = vld [vmem:[%s2357_s1 + $0x18] sm:$0xff]   ;;  %v1845_v8 = vld [vmem:[%s2357_s1 + $0x10] sm:$0xff]   ;;  %vm761_vm1 = vcmask 1040384   ;;  %vm762_vm2 = vcmask 1041408  }
   0xe   : > { %769 = vmatpush1.bf16.msra.mxu0 %v1840_v0  ;;  %1804 = vmatpush1.bf16.msra.mxu1 %v1840_v0  ;;  %s2028_s28 = scalar_lea.vmem %s2356_s0, %s1729_s25  ;;  %v1846_v9 = vld [vmem:[%s2357_s1 + $0x8] sm:$0xff]   ;;  %v1971_v10 = vmov 65535   ;;  %v1847_v12 = vld [vmem:[%s2357_s1] sm:$0xff]   ;;  %s1555_s19 = sshll.u32 %s2365_s22, 2  ;;  %vm1377_vm3 = vcmask 519168  }
   0xf   : > { %770 = vmatprep.subr.bf16.mxu0 %v1970_v1  ;;  %1795 = vmatprep.subr.bf16.mxu1 %v1970_v1  ;;  %v1852_v6 = vld [vmem:[%s2028_s28 + $0x4] ss:$8 sps:$4 sm:$0xff]   ;;  %v763_v11 = vsel %vm761_vm1, 4294967295, %v1971_v10  ;;  %v1848_v13 = vld [vmem:[%s2357_s1 + $0x48] ss:$0 sps:$4 sm:$0x33]   ;;  %s2155_s23 = scalar_lea.vmem %s2359_s3, %s1555_s19 }
  0x10   : > { %v1855_v7 = vld [vmem:[%s2028_s28 + $0x104] ss:$8 sps:$4 sm:$0xff]   ;;  %1631 = vmatprep.mubr.msk.bf16.mxu0 %vm664_vm0, %v1852_v6  ;;  %v764_v14 = vsel %vm762_vm2, %v763_v11, 0  ;;  %v1850_v17 = vld [vmem:[%s2028_s28] ss:$8 sps:$4 sm:$0xff]  }
  0x11   : > { %1647 = vmatprep.mubr.msk.bf16.mxu1 %vm664_vm0, %v1855_v7  ;;  %v766_v15 = vand.u32 %v1848_v13, %v764_v14  ;;  %v1849_v16 = vld [vmem:[%s2357_s1 + $0x40] sm:$0xff]   ;;  %v1856_v19 = vld [vmem:[%s2028_s28 + $0x14] ss:$8 sps:$4 sm:$0xff]   ;;  %v1860_v21 = vld [vmem:[%s2028_s28 + $0x10] ss:$8 sps:$4 sm:$0xff]  }
  0x12   : > { %771 = vmatpush1.bf16.msra.mxu0 %v1841_v2  ;;  %1805 = vmatpush1.bf16.msra.mxu1 %v1841_v2  ;;  %v1853_v18 = vld [vmem:[%s2028_s28 + $0x100] ss:$8 sps:$4 sm:$0xff]   ;;  %v1858_v20 = vld [vmem:[%s2028_s28 + $0x114] ss:$8 sps:$4 sm:$0xff]   ;;  %v1861_v22 = vld [vmem:[%s2028_s28 + $0x110] ss:$8 sps:$4 sm:$0xff]  }
  0x13   : > { %772 = vmatprep.subr.bf16.mxu0 %v1970_v1  ;;  %1796 = vmatprep.subr.bf16.mxu1 %v1970_v1  ;;  %v1862_v23 = vld [vmem:[%s2028_s28 + $0x24] ss:$8 sps:$4 sm:$0xff]   ;;  %v1866_v25 = vld [vmem:[%s2028_s28 + $0x20] ss:$8 sps:$4 sm:$0xff]   ;;  %v1868_v27 = vld [vmem:[%s2028_s28 + $0x34] ss:$8 sps:$4 sm:$0xff]  }
  0x14   : > { %v1864_v24 = vld [vmem:[%s2028_s28 + $0x124] ss:$8 sps:$4 sm:$0xff]   ;;  %v1867_v26 = vld [vmem:[%s2028_s28 + $0x120] ss:$8 sps:$4 sm:$0xff]   ;;  %v1870_v28 = vld [vmem:[%s2028_s28 + $0x134] ss:$8 sps:$4 sm:$0xff]  }
  0x15   : > { %v1872_v29 = vld [vmem:[%s2028_s28 + $0x30] ss:$8 sps:$4 sm:$0xff]   ;;  %v1874_v31 = vld [vmem:[%s2028_s28 + $0x44] ss:$8 sps:$4 sm:$0xff]   ;;  %v1878_v33 = vld [vmem:[%s2028_s28 + $0x40] ss:$8 sps:$4 sm:$0xff]  }
  0x16   : > { %773 = vmatpush1.bf16.msra.mxu0 %v1842_v3  ;;  %1806 = vmatpush1.bf16.msra.mxu1 %v1842_v3  ;;  %v1873_v30 = vld [vmem:[%s2028_s28 + $0x130] ss:$8 sps:$4 sm:$0xff]   ;;  %v1876_v32 = vld [vmem:[%s2028_s28 + $0x144] ss:$8 sps:$4 sm:$0xff]   ;;  %v1879_v34 = vld [vmem:[%s2028_s28 + $0x140] ss:$8 sps:$4 sm:$0xff]  }
  0x17   : > { %774 = vmatprep.subr.bf16.mxu0 %v1970_v1  ;;  %1797 = vmatprep.subr.bf16.mxu1 %v1970_v1  ;;  %v1880_v35 = vld [vmem:[%s2028_s28 + $0x54] ss:$8 sps:$4 sm:$0xff]   ;;  %v1884_v37 = vld [vmem:[%s2028_s28 + $0x50] ss:$8 sps:$4 sm:$0xff]   ;;  %v1886_v39 = vld [vmem:[%s2028_s28 + $0x64] ss:$8 sps:$4 sm:$0xff]  }
  0x18   : > { %v1882_v36 = vld [vmem:[%s2028_s28 + $0x154] ss:$8 sps:$4 sm:$0xff]   ;;  %v1885_v38 = vld [vmem:[%s2028_s28 + $0x150] ss:$8 sps:$4 sm:$0xff]   ;;  %v1888_v40 = vld [vmem:[%s2028_s28 + $0x164] ss:$8 sps:$4 sm:$0xff]  }
  0x19   : > { %v1890_v41 = vld [vmem:[%s2028_s28 + $0x60] ss:$8 sps:$4 sm:$0xff]   ;;  %v1892_v43 = vld [vmem:[%s2028_s28 + $0x74] ss:$8 sps:$4 sm:$0xff]   ;;  %v1896_v45 = vld [vmem:[%s2028_s28 + $0x70] ss:$8 sps:$4 sm:$0xff]  }
  0x1a   : > { %775 = vmatpush1.bf16.msra.mxu0 %v1843_v4  ;;  %1807 = vmatpush1.bf16.msra.mxu1 %v1843_v4  ;;  %v1891_v42 = vld [vmem:[%s2028_s28 + $0x160] ss:$8 sps:$4 sm:$0xff]   ;;  %v1894_v44 = vld [vmem:[%s2028_s28 + $0x174] ss:$8 sps:$4 sm:$0xff]   ;;  %v1897_v46 = vld [vmem:[%s2028_s28 + $0x170] ss:$8 sps:$4 sm:$0xff]  }
  0x1b   : > { %776 = vmatprep.subr.bf16.mxu0 %v1970_v1  ;;  %1798 = vmatprep.subr.bf16.mxu1 %v1970_v1  ;;  %v1898_v47 = vld [vmem:[%s2028_s28 + $0x84] ss:$8 sps:$4 sm:$0xff]   ;;  %v1902_v49 = vld [vmem:[%s2028_s28 + $0x80] ss:$8 sps:$4 sm:$0xff]   ;;  %v1904_v51 = vld [vmem:[%s2028_s28 + $0x94] ss:$8 sps:$4 sm:$0xff]  }
  0x1c   : > { %v1900_v48 = vld [vmem:[%s2028_s28 + $0x184] ss:$8 sps:$4 sm:$0xff]   ;;  %v1903_v50 = vld [vmem:[%s2028_s28 + $0x180] ss:$8 sps:$4 sm:$0xff]   ;;  %v1906_v52 = vld [vmem:[%s2028_s28 + $0x194] ss:$8 sps:$4 sm:$0xff]  }
  0x1d   : > { %v1908_v53 = vld [vmem:[%s2028_s28 + $0x90] ss:$8 sps:$4 sm:$0xff]   ;;  %v1910_v55 = vld [vmem:[%s2028_s28 + $0xa4] ss:$8 sps:$4 sm:$0xff]   ;;  %v1914_v57 = vld [vmem:[%s2028_s28 + $0xa0] ss:$8 sps:$4 sm:$0xff]  }
  0x1e   : > { %777 = vmatpush1.bf16.msra.mxu0 %v1844_v5  ;;  %1808 = vmatpush1.bf16.msra.mxu1 %v1844_v5  ;;  %v1909_v54 = vld [vmem:[%s2028_s28 + $0x190] ss:$8 sps:$4 sm:$0xff]   ;;  %v1912_v56 = vld [vmem:[%s2028_s28 + $0x1a4] ss:$8 sps:$4 sm:$0xff]   ;;  %v1915_v58 = vld [vmem:[%s2028_s28 + $0x1a0] ss:$8 sps:$4 sm:$0xff]  }
  0x1f   : > { %778 = vmatprep.subr.bf16.mxu0 %v1970_v1  ;;  %1799 = vmatprep.subr.bf16.mxu1 %v1970_v1  ;;  %v1916_v59 = vld [vmem:[%s2028_s28 + $0xb4] ss:$8 sps:$4 sm:$0xff]   ;;  %v1920_v61 = vld [vmem:[%s2028_s28 + $0xb0] ss:$8 sps:$4 sm:$0xff]   ;;  %v1922_v63 = vld [vmem:[%s2028_s28 + $0xc4] ss:$8 sps:$4 sm:$0xff]  }
  0x20   : > { %v1918_v60 = vld [vmem:[%s2028_s28 + $0x1b4] ss:$8 sps:$4 sm:$0xff]   ;;  %v1921_v62 = vld [vmem:[%s2028_s28 + $0x1b0] ss:$8 sps:$4 sm:$0xff]   ;;  %v1924_v0 = vld [vmem:[%s2028_s28 + $0x1c4] ss:$8 sps:$4 sm:$0xff]  }
  0x21   : > { %v1927_v2 = vld [vmem:[%s2028_s28 + $0x1c0] ss:$8 sps:$4 sm:$0xff]   ;;  %v1928_v3 = vld [vmem:[%s2028_s28 + $0xd4] ss:$8 sps:$4 sm:$0xff]   ;;  %v1932_v5 = vld [vmem:[%s2028_s28 + $0xd0] ss:$8 sps:$4 sm:$0xff]  }
  0x22   : > { %779 = vmatpush1.bf16.msra.mxu0 %v1845_v8  ;;  %1809 = vmatpush1.bf16.msra.mxu1 %v1845_v8  ;;  %v1930_v4 = vld [vmem:[%s2028_s28 + $0x1d4] ss:$8 sps:$4 sm:$0xff]   ;;  %v1933_v6 = vld [vmem:[%s2028_s28 + $0x1d0] ss:$8 sps:$4 sm:$0xff]   ;;  %v1934_v7 = vld [vmem:[%s2028_s28 + $0xe4] ss:$8 sps:$4 sm:$0xff]  }
  0x23   : > { %780 = vmatprep.subr.bf16.mxu0 %v1970_v1  ;;  %1800 = vmatprep.subr.bf16.mxu1 %v1970_v1  ;;  %v1936_v8 = vld [vmem:[%s2028_s28 + $0x1e4] ss:$8 sps:$4 sm:$0xff]   ;;  %v1939_v10 = vld [vmem:[%s2028_s28 + $0x1e0] ss:$8 sps:$4 sm:$0xff]   ;;  %v1940_v11 = vld [vmem:[%s2028_s28 + $0xf4] ss:$8 sps:$4 sm:$0xff]  }
  0x24   : > { %v1944_v13 = vld [vmem:[%s2028_s28 + $0xf0] ss:$8 sps:$4 sm:$0xff]  }
  0x25   : > { %v1945_v14 = vld [vmem:[%s2028_s28 + $0x1f0] ss:$8 sps:$4 sm:$0xff]  }
  0x26   : > { %781 = vmatpush1.bf16.msra.mxu0 %v1846_v9  ;;  %1810 = vmatpush1.bf16.msra.mxu1 %v1846_v9  ;;  %v1938_v9 = vld [vmem:[%s2028_s28 + $0xe0] ss:$8 sps:$4 sm:$0xff]  }
  0x27   : > { %782 = vmatprep.subr.bf16.mxu0 %v1970_v1  ;;  %1801 = vmatprep.subr.bf16.mxu1 %v1970_v1 }
  0x2a   : > { %783 = vmatpush1.bf16.msra.mxu0 %v1847_v12  ;;  %1811 = vmatpush1.bf16.msra.mxu1 %v1847_v12  ;;  %v1942_v12 = vld [vmem:[%s2028_s28 + $0x1f4] ss:$8 sps:$4 sm:$0xff]  }
  0x2b   : > { %796 = vmatprep.subr.bf16.mxu0 %v1970_v1  ;;  %1802 = vmatprep.subr.bf16.mxu1 %v1970_v1 }
  0x2e   : > { %797 = vmatpush2.bf16.msra.mxu0 %v766_v15  ;;  %1812 = vmatpush2.bf16.msra.mxu1 %v766_v15  ;;  %v2147_v15 = vld [vmem:[%s2358_s2] ss:$0 sm:$0xff] }
  0x2f   : > { %798 = vmatprep.subr.bf16.mxu0 %v1970_v1  ;;  %1803 = vmatprep.subr.bf16.mxu1 %v1970_v1  ;;  %v1926_v1 = vld [vmem:[%s2028_s28 + $0xc0] ss:$8 sps:$4 sm:$0xff]  }
  0x32   : > { %799 = vmatpush2.bf16.msra.mxu0 %v1849_v16  ;;  %1813 = vmatpush2.bf16.msra.mxu1 %v1849_v16 }
  0x35   : > { %801 = vmatmul.mubr.bf16.vlgmr.msra.gmra.mxu0 %v1850_v17  ;;  %929 = vmatmul.mubr.bf16.vlgmr.msra.gmra.mxu1 %v1853_v18 }
  0x36   : > { %1632 = vmatprep.mubr.msk.bf16.mxu0 %vm664_vm0, %v1856_v19  ;;  %1648 = vmatprep.mubr.msk.bf16.mxu1 %vm664_vm0, %v1858_v20 }
  0x3d   : > { %809 = vmatmul.mubr.bf16.gmra.mxu0 %v1860_v21  ;;  %937 = vmatmul.mubr.bf16.gmra.mxu1 %v1861_v22 }
  0x3e   : > { %1633 = vmatprep.mubr.msk.bf16.mxu0 %vm664_vm0, %v1862_v23  ;;  %1649 = vmatprep.mubr.msk.bf16.mxu1 %vm664_vm0, %v1864_v24 }
  0x45   : > { %817 = vmatmul.mubr.bf16.gmra.mxu0 %v1866_v25  ;;  %945 = vmatmul.mubr.bf16.gmra.mxu1 %v1867_v26 }
  0x46   : > { %1634 = vmatprep.mubr.msk.bf16.mxu0 %vm664_vm0, %v1868_v27  ;;  %1650 = vmatprep.mubr.msk.bf16.mxu1 %vm664_vm0, %v1870_v28 }
  0x4d   : > { %825 = vmatmul.mubr.bf16.gmra.mxu0 %v1872_v29  ;;  %953 = vmatmul.mubr.bf16.gmra.mxu1 %v1873_v30 }
  0x4e   : > { %1635 = vmatprep.mubr.msk.bf16.mxu0 %vm664_vm0, %v1874_v31  ;;  %1651 = vmatprep.mubr.msk.bf16.mxu1 %vm664_vm0, %v1876_v32 }
  0x55   : > { %833 = vmatmul.mubr.bf16.gmra.mxu0 %v1878_v33  ;;  %961 = vmatmul.mubr.bf16.gmra.mxu1 %v1879_v34 }
  0x56   : > { %1636 = vmatprep.mubr.msk.bf16.mxu0 %vm664_vm0, %v1880_v35  ;;  %1652 = vmatprep.mubr.msk.bf16.mxu1 %vm664_vm0, %v1882_v36 }
  0x5d   : > { %841 = vmatmul.mubr.bf16.gmra.mxu0 %v1884_v37  ;;  %969 = vmatmul.mubr.bf16.gmra.mxu1 %v1885_v38 }
  0x5e   : > { %1637 = vmatprep.mubr.msk.bf16.mxu0 %vm664_vm0, %v1886_v39  ;;  %1653 = vmatprep.mubr.msk.bf16.mxu1 %vm664_vm0, %v1888_v40 }
  0x65   : > { %849 = vmatmul.mubr.bf16.gmra.mxu0 %v1890_v41  ;;  %977 = vmatmul.mubr.bf16.gmra.mxu1 %v1891_v42 }
  0x66   : > { %1638 = vmatprep.mubr.msk.bf16.mxu0 %vm664_vm0, %v1892_v43  ;;  %1654 = vmatprep.mubr.msk.bf16.mxu1 %vm664_vm0, %v1894_v44 }
  0x6d   : > { %857 = vmatmul.mubr.bf16.gmra.mxu0 %v1896_v45  ;;  %985 = vmatmul.mubr.bf16.gmra.mxu1 %v1897_v46 }
  0x6e   : > { %1639 = vmatprep.mubr.msk.bf16.mxu0 %vm664_vm0, %v1898_v47  ;;  %1655 = vmatprep.mubr.msk.bf16.mxu1 %vm664_vm0, %v1900_v48 }
  0x75   : > { %865 = vmatmul.mubr.bf16.gmra.mxu0 %v1902_v49  ;;  %993 = vmatmul.mubr.bf16.gmra.mxu1 %v1903_v50 }
  0x76   : > { %1640 = vmatprep.mubr.msk.bf16.mxu0 %vm664_vm0, %v1904_v51  ;;  %1656 = vmatprep.mubr.msk.bf16.mxu1 %vm664_vm0, %v1906_v52 }
  0x7d   : > { %873 = vmatmul.mubr.bf16.gmra.mxu0 %v1908_v53  ;;  %1001 = vmatmul.mubr.bf16.gmra.mxu1 %v1909_v54 }
  0x7e   : > { %1641 = vmatprep.mubr.msk.bf16.mxu0 %vm664_vm0, %v1910_v55  ;;  %1657 = vmatprep.mubr.msk.bf16.mxu1 %vm664_vm0, %v1912_v56 }
  0x85   : > { %881 = vmatmul.mubr.bf16.gmra.mxu0 %v1914_v57  ;;  %1009 = vmatmul.mubr.bf16.gmra.mxu1 %v1915_v58 }
  0x86   : > { %1642 = vmatprep.mubr.msk.bf16.mxu0 %vm664_vm0, %v1916_v59  ;;  %1658 = vmatprep.mubr.msk.bf16.mxu1 %vm664_vm0, %v1918_v60 }
  0x8d   : > { %889 = vmatmul.mubr.bf16.gmra.mxu0 %v1920_v61  ;;  %1017 = vmatmul.mubr.bf16.gmra.mxu1 %v1921_v62 }
  0x8e   : > { %1643 = vmatprep.mubr.msk.bf16.mxu0 %vm664_vm0, %v1922_v63  ;;  %1659 = vmatprep.mubr.msk.bf16.mxu1 %vm664_vm0, %v1924_v0 }
  0x95   : > { %897 = vmatmul.mubr.bf16.gmra.mxu0 %v1926_v1  ;;  %1025 = vmatmul.mubr.bf16.gmra.mxu1 %v1927_v2 }
  0x96   : > { %1644 = vmatprep.mubr.msk.bf16.mxu0 %vm664_vm0, %v1928_v3  ;;  %1660 = vmatprep.mubr.msk.bf16.mxu1 %vm664_vm0, %v1930_v4 }
  0x9d   : > { %905 = vmatmul.mubr.bf16.gmra.mxu0 %v1932_v5  ;;  %1033 = vmatmul.mubr.bf16.gmra.mxu1 %v1933_v6 }
  0x9e   : > { %1645 = vmatprep.mubr.msk.bf16.mxu0 %vm664_vm0, %v1934_v7  ;;  %1661 = vmatprep.mubr.msk.bf16.mxu1 %vm664_vm0, %v1936_v8 }
  0xa5   : > { %913 = vmatmul.mubr.bf16.gmra.mxu0 %v1938_v9  ;;  %1041 = vmatmul.mubr.bf16.gmra.mxu1 %v1939_v10 }
  0xa6   : > { %1646 = vmatprep.mubr.msk.bf16.mxu0 %vm664_vm0, %v1940_v11  ;;  %1662 = vmatprep.mubr.msk.bf16.mxu1 %vm664_vm0, %v1942_v12 }
  0xad   : > { %921 = vmatmul.mubr.bf16.gmra.mxu0 %v1944_v13  ;;  %1049 = vmatmul.mubr.bf16.gmra.mxu1 %v1945_v14 }
  0xf5   : > { %v802_v16 = vpop.f32.mrf.mxu0  ;;  %v930_v17 = vpop.f32.mrf.mxu1 }
  0xf6   : > { %v803_v18 = vadd.f32 %v2147_v15, %v802_v16  ;;  %v931_v19 = vadd.f32 %v2147_v15, %v930_v17 }
  0xf7   : > { %v804_v20 = vpop.f32.mrf.mxu0  ;;  %v932_v21 = vpop.f32.mrf.mxu1 }
  0xf8   : > { %v1057_v22 = vmax.f32 %v803_v18, 0.0  ;;  %v1089_v23 = vmax.f32 %v931_v19, 0.0 }
  0xf9   : > { %v805_v24 = vpop.f32.mrf.mxu0  ;;  %v933_v25 = vpop.f32.mrf.mxu1 }
  0xfa   : > { %v1730_v26 = vpack.c.bf16 %v1057_v22, %v1057_v22  ;;  %v1762_v27 = vpack.c.bf16 %v1089_v23, %v1089_v23  ;;  %v806_v28 = vadd.f32 %v2147_v15, %v805_v24  ;;  %v934_v29 = vadd.f32 %v2147_v15, %v933_v25 }
  0xfb   : > { %v807_v30 = vpop.f32.mrf.mxu0  ;;  %v935_v31 = vpop.f32.mrf.mxu1 }
  0xfc   : > { %1378 = vst.msk [vmem:[%s2155_s23] sm:$0xf] %vm1377_vm3, %v1730_v26  ;;  %1410 = vst.msk [vmem:[%s2155_s23 + $0x80] sm:$0xf] %vm1377_vm3, %v1762_v27  ;;  %v1058_v32 = vmax.f32 %v806_v28, 0.0  ;;  %v1090_v33 = vmax.f32 %v934_v29, 0.0 }
  0xfd   : > { %v810_v34 = vpop.f32.mrf.mxu0  ;;  %v938_v35 = vpop.f32.mrf.mxu1 }
  0xfe   : > { %v1731_v36 = vpack.c.bf16 %v1058_v32, %v1058_v32  ;;  %v1763_v37 = vpack.c.bf16 %v1090_v33, %v1090_v33  ;;  %v811_v38 = vadd.f32 %v2147_v15, %v810_v34  ;;  %v939_v39 = vadd.f32 %v2147_v15, %v938_v35 }
  0xff   : > { %v812_v40 = vpop.f32.mrf.mxu0  ;;  %v940_v41 = vpop.f32.mrf.mxu1 }
 0x100   : > { %1379 = vst.msk [vmem:[%s2155_s23 + $0x4] sm:$0xf] %vm1377_vm3, %v1731_v36  ;;  %1411 = vst.msk [vmem:[%s2155_s23 + $0x84] sm:$0xf] %vm1377_vm3, %v1763_v37  ;;  %v1059_v42 = vmax.f32 %v811_v38, 0.0  ;;  %v1091_v43 = vmax.f32 %v939_v39, 0.0 }
 0x101   : > { %v813_v44 = vpop.f32.mrf.mxu0  ;;  %v941_v45 = vpop.f32.mrf.mxu1 }
 0x102   : > { %v1732_v46 = vpack.c.bf16 %v1059_v42, %v1059_v42  ;;  %v1764_v47 = vpack.c.bf16 %v1091_v43, %v1091_v43  ;;  %v814_v48 = vadd.f32 %v2147_v15, %v813_v44  ;;  %v942_v49 = vadd.f32 %v2147_v15, %v941_v45 }
 0x103   : > { %v815_v50 = vpop.f32.mrf.mxu0  ;;  %v943_v51 = vpop.f32.mrf.mxu1 }
 0x104   : > { %1380 = vst.msk [vmem:[%s2155_s23 + $0x8] sm:$0xf] %vm1377_vm3, %v1732_v46  ;;  %1412 = vst.msk [vmem:[%s2155_s23 + $0x88] sm:$0xf] %vm1377_vm3, %v1764_v47  ;;  %v1060_v52 = vmax.f32 %v814_v48, 0.0  ;;  %v1092_v53 = vmax.f32 %v942_v49, 0.0 }
 0x105   : > { %v818_v54 = vpop.f32.mrf.mxu0  ;;  %v946_v55 = vpop.f32.mrf.mxu1 }
 0x106   : > { %v1733_v56 = vpack.c.bf16 %v1060_v52, %v1060_v52  ;;  %v1765_v57 = vpack.c.bf16 %v1092_v53, %v1092_v53  ;;  %v819_v58 = vadd.f32 %v2147_v15, %v818_v54  ;;  %v947_v59 = vadd.f32 %v2147_v15, %v946_v55 }
 0x107   : > { %v820_v60 = vpop.f32.mrf.mxu0  ;;  %v948_v61 = vpop.f32.mrf.mxu1 }
 0x108   : > { %1381 = vst.msk [vmem:[%s2155_s23 + $0xc] sm:$0xf] %vm1377_vm3, %v1733_v56  ;;  %1413 = vst.msk [vmem:[%s2155_s23 + $0x8c] sm:$0xf] %vm1377_vm3, %v1765_v57  ;;  %v1061_v62 = vmax.f32 %v819_v58, 0.0  ;;  %v1093_v63 = vmax.f32 %v947_v59, 0.0 }
 0x109   : > { %v821_v0 = vpop.f32.mrf.mxu0  ;;  %v949_v1 = vpop.f32.mrf.mxu1 }
 0x10a   : > { %v1734_v2 = vpack.c.bf16 %v1061_v62, %v1061_v62  ;;  %v1766_v3 = vpack.c.bf16 %v1093_v63, %v1093_v63  ;;  %v822_v4 = vadd.f32 %v2147_v15, %v821_v0  ;;  %v950_v5 = vadd.f32 %v2147_v15, %v949_v1 }
 0x10b   : > { %v823_v6 = vpop.f32.mrf.mxu0  ;;  %v951_v7 = vpop.f32.mrf.mxu1 }
 0x10c   : > { %1382 = vst.msk [vmem:[%s2155_s23 + $0x10] sm:$0xf] %vm1377_vm3, %v1734_v2  ;;  %1414 = vst.msk [vmem:[%s2155_s23 + $0x90] sm:$0xf] %vm1377_vm3, %v1766_v3  ;;  %v1062_v8 = vmax.f32 %v822_v4, 0.0  ;;  %v1094_v9 = vmax.f32 %v950_v5, 0.0 }
 0x10d   : > { %v826_v10 = vpop.f32.mrf.mxu0  ;;  %v954_v11 = vpop.f32.mrf.mxu1 }
 0x10e   : > { %v1735_v12 = vpack.c.bf16 %v1062_v8, %v1062_v8  ;;  %v1767_v13 = vpack.c.bf16 %v1094_v9, %v1094_v9  ;;  %v827_v14 = vadd.f32 %v2147_v15, %v826_v10  ;;  %v955_v16 = vadd.f32 %v2147_v15, %v954_v11 }
 0x10f   : > { %v828_v17 = vpop.f32.mrf.mxu0  ;;  %v956_v18 = vpop.f32.mrf.mxu1 }
 0x110   : > { %1383 = vst.msk [vmem:[%s2155_s23 + $0x14] sm:$0xf] %vm1377_vm3, %v1735_v12  ;;  %1415 = vst.msk [vmem:[%s2155_s23 + $0x94] sm:$0xf] %vm1377_vm3, %v1767_v13  ;;  %v1063_v19 = vmax.f32 %v827_v14, 0.0  ;;  %v1095_v20 = vmax.f32 %v955_v16, 0.0 }
 0x111   : > { %v829_v21 = vpop.f32.mrf.mxu0  ;;  %v957_v22 = vpop.f32.mrf.mxu1 }
 0x112   : > { %v1736_v23 = vpack.c.bf16 %v1063_v19, %v1063_v19  ;;  %v1768_v24 = vpack.c.bf16 %v1095_v20, %v1095_v20  ;;  %v830_v25 = vadd.f32 %v2147_v15, %v829_v21  ;;  %v958_v26 = vadd.f32 %v2147_v15, %v957_v22 }
 0x113   : > { %v831_v27 = vpop.f32.mrf.mxu0  ;;  %v959_v28 = vpop.f32.mrf.mxu1 }
 0x114   : > { %1384 = vst.msk [vmem:[%s2155_s23 + $0x18] sm:$0xf] %vm1377_vm3, %v1736_v23  ;;  %1416 = vst.msk [vmem:[%s2155_s23 + $0x98] sm:$0xf] %vm1377_vm3, %v1768_v24  ;;  %v1064_v29 = vmax.f32 %v830_v25, 0.0  ;;  %v1096_v30 = vmax.f32 %v958_v26, 0.0 }
 0x115   : > { %v834_v31 = vpop.f32.mrf.mxu0  ;;  %v962_v32 = vpop.f32.mrf.mxu1 }
 0x116   : > { %v1737_v33 = vpack.c.bf16 %v1064_v29, %v1064_v29  ;;  %v1769_v34 = vpack.c.bf16 %v1096_v30, %v1096_v30  ;;  %v835_v35 = vadd.f32 %v2147_v15, %v834_v31  ;;  %v963_v36 = vadd.f32 %v2147_v15, %v962_v32 }
 0x117   : > { %v836_v37 = vpop.f32.mrf.mxu0  ;;  %v964_v38 = vpop.f32.mrf.mxu1 }
 0x118   : > { %1385 = vst.msk [vmem:[%s2155_s23 + $0x1c] sm:$0xf] %vm1377_vm3, %v1737_v33  ;;  %1417 = vst.msk [vmem:[%s2155_s23 + $0x9c] sm:$0xf] %vm1377_vm3, %v1769_v34  ;;  %v1065_v39 = vmax.f32 %v835_v35, 0.0  ;;  %v1097_v40 = vmax.f32 %v963_v36, 0.0 }
 0x119   : > { %v837_v41 = vpop.f32.mrf.mxu0  ;;  %v965_v42 = vpop.f32.mrf.mxu1 }
 0x11a   : > { %v1738_v43 = vpack.c.bf16 %v1065_v39, %v1065_v39  ;;  %v1770_v44 = vpack.c.bf16 %v1097_v40, %v1097_v40  ;;  %v838_v45 = vadd.f32 %v2147_v15, %v837_v41  ;;  %v966_v46 = vadd.f32 %v2147_v15, %v965_v42 }
 0x11b   : > { %v839_v47 = vpop.f32.mrf.mxu0  ;;  %v967_v48 = vpop.f32.mrf.mxu1 }
 0x11c   : > { %1386 = vst.msk [vmem:[%s2155_s23 + $0x20] sm:$0xf] %vm1377_vm3, %v1738_v43  ;;  %1418 = vst.msk [vmem:[%s2155_s23 + $0xa0] sm:$0xf] %vm1377_vm3, %v1770_v44  ;;  %v1066_v49 = vmax.f32 %v838_v45, 0.0  ;;  %v1098_v50 = vmax.f32 %v966_v46, 0.0 }
 0x11d   : > { %v842_v51 = vpop.f32.mrf.mxu0  ;;  %v970_v52 = vpop.f32.mrf.mxu1 }
 0x11e   : > { %v1739_v53 = vpack.c.bf16 %v1066_v49, %v1066_v49  ;;  %v1771_v54 = vpack.c.bf16 %v1098_v50, %v1098_v50  ;;  %v843_v55 = vadd.f32 %v2147_v15, %v842_v51  ;;  %v971_v56 = vadd.f32 %v2147_v15, %v970_v52 }
 0x11f   : > { %v844_v57 = vpop.f32.mrf.mxu0  ;;  %v972_v58 = vpop.f32.mrf.mxu1 }
 0x120   : > { %1387 = vst.msk [vmem:[%s2155_s23 + $0x24] sm:$0xf] %vm1377_vm3, %v1739_v53  ;;  %1419 = vst.msk [vmem:[%s2155_s23 + $0xa4] sm:$0xf] %vm1377_vm3, %v1771_v54  ;;  %v1067_v59 = vmax.f32 %v843_v55, 0.0  ;;  %v1099_v60 = vmax.f32 %v971_v56, 0.0 }
 0x121   : > { %v845_v61 = vpop.f32.mrf.mxu0  ;;  %v973_v62 = vpop.f32.mrf.mxu1 }
 0x122   : > { %v1740_v63 = vpack.c.bf16 %v1067_v59, %v1067_v59  ;;  %v1772_v0 = vpack.c.bf16 %v1099_v60, %v1099_v60  ;;  %v846_v1 = vadd.f32 %v2147_v15, %v845_v61  ;;  %v974_v2 = vadd.f32 %v2147_v15, %v973_v62 }
 0x123   : > { %v847_v3 = vpop.f32.mrf.mxu0  ;;  %v975_v4 = vpop.f32.mrf.mxu1 }
 0x124   : > { %1388 = vst.msk [vmem:[%s2155_s23 + $0x28] sm:$0xf] %vm1377_vm3, %v1740_v63  ;;  %1420 = vst.msk [vmem:[%s2155_s23 + $0xa8] sm:$0xf] %vm1377_vm3, %v1772_v0  ;;  %v1068_v5 = vmax.f32 %v846_v1, 0.0  ;;  %v1100_v6 = vmax.f32 %v974_v2, 0.0 }
 0x125   : > { %v850_v7 = vpop.f32.mrf.mxu0  ;;  %v978_v8 = vpop.f32.mrf.mxu1 }
 0x126   : > { %v1741_v9 = vpack.c.bf16 %v1068_v5, %v1068_v5  ;;  %v1773_v10 = vpack.c.bf16 %v1100_v6, %v1100_v6  ;;  %v851_v11 = vadd.f32 %v2147_v15, %v850_v7  ;;  %v979_v12 = vadd.f32 %v2147_v15, %v978_v8 }
 0x127   : > { %v852_v13 = vpop.f32.mrf.mxu0  ;;  %v980_v14 = vpop.f32.mrf.mxu1 }
 0x128   : > { %1389 = vst.msk [vmem:[%s2155_s23 + $0x2c] sm:$0xf] %vm1377_vm3, %v1741_v9  ;;  %1421 = vst.msk [vmem:[%s2155_s23 + $0xac] sm:$0xf] %vm1377_vm3, %v1773_v10  ;;  %v1069_v16 = vmax.f32 %v851_v11, 0.0  ;;  %v1101_v17 = vmax.f32 %v979_v12, 0.0 }
 0x129   : > { %v853_v18 = vpop.f32.mrf.mxu0  ;;  %v981_v19 = vpop.f32.mrf.mxu1 }
 0x12a   : > { %v1742_v20 = vpack.c.bf16 %v1069_v16, %v1069_v16  ;;  %v1774_v21 = vpack.c.bf16 %v1101_v17, %v1101_v17  ;;  %v854_v22 = vadd.f32 %v2147_v15, %v853_v18  ;;  %v982_v23 = vadd.f32 %v2147_v15, %v981_v19 }
 0x12b   : > { %v855_v24 = vpop.f32.mrf.mxu0  ;;  %v983_v25 = vpop.f32.mrf.mxu1 }
 0x12c   : > { %1390 = vst.msk [vmem:[%s2155_s23 + $0x30] sm:$0xf] %vm1377_vm3, %v1742_v20  ;;  %1422 = vst.msk [vmem:[%s2155_s23 + $0xb0] sm:$0xf] %vm1377_vm3, %v1774_v21  ;;  %v1070_v26 = vmax.f32 %v854_v22, 0.0  ;;  %v1102_v27 = vmax.f32 %v982_v23, 0.0 }
 0x12d   : > { %v858_v28 = vpop.f32.mrf.mxu0  ;;  %v986_v29 = vpop.f32.mrf.mxu1 }
 0x12e   : > { %v1743_v30 = vpack.c.bf16 %v1070_v26, %v1070_v26  ;;  %v1775_v31 = vpack.c.bf16 %v1102_v27, %v1102_v27  ;;  %v859_v32 = vadd.f32 %v2147_v15, %v858_v28  ;;  %v987_v33 = vadd.f32 %v2147_v15, %v986_v29 }
 0x12f   : > { %v860_v34 = vpop.f32.mrf.mxu0  ;;  %v988_v35 = vpop.f32.mrf.mxu1 }
 0x130   : > { %1391 = vst.msk [vmem:[%s2155_s23 + $0x34] sm:$0xf] %vm1377_vm3, %v1743_v30  ;;  %1423 = vst.msk [vmem:[%s2155_s23 + $0xb4] sm:$0xf] %vm1377_vm3, %v1775_v31  ;;  %v1071_v36 = vmax.f32 %v859_v32, 0.0  ;;  %v1103_v37 = vmax.f32 %v987_v33, 0.0 }
 0x131   : > { %v861_v38 = vpop.f32.mrf.mxu0  ;;  %v989_v39 = vpop.f32.mrf.mxu1 }
 0x132   : > { %v1744_v40 = vpack.c.bf16 %v1071_v36, %v1071_v36  ;;  %v1776_v41 = vpack.c.bf16 %v1103_v37, %v1103_v37  ;;  %v862_v42 = vadd.f32 %v2147_v15, %v861_v38  ;;  %v990_v43 = vadd.f32 %v2147_v15, %v989_v39 }
 0x133   : > { %v863_v44 = vpop.f32.mrf.mxu0  ;;  %v991_v45 = vpop.f32.mrf.mxu1 }
 0x134   : > { %1392 = vst.msk [vmem:[%s2155_s23 + $0x38] sm:$0xf] %vm1377_vm3, %v1744_v40  ;;  %1424 = vst.msk [vmem:[%s2155_s23 + $0xb8] sm:$0xf] %vm1377_vm3, %v1776_v41  ;;  %v1072_v46 = vmax.f32 %v862_v42, 0.0  ;;  %v1104_v47 = vmax.f32 %v990_v43, 0.0 }
 0x135   : > { %v866_v48 = vpop.f32.mrf.mxu0  ;;  %v994_v49 = vpop.f32.mrf.mxu1 }
 0x136   : > { %v1745_v50 = vpack.c.bf16 %v1072_v46, %v1072_v46  ;;  %v1777_v51 = vpack.c.bf16 %v1104_v47, %v1104_v47  ;;  %v867_v52 = vadd.f32 %v2147_v15, %v866_v48  ;;  %v995_v53 = vadd.f32 %v2147_v15, %v994_v49 }
 0x137   : > { %v868_v54 = vpop.f32.mrf.mxu0  ;;  %v996_v55 = vpop.f32.mrf.mxu1 }
 0x138   : > { %1393 = vst.msk [vmem:[%s2155_s23 + $0x3c] sm:$0xf] %vm1377_vm3, %v1745_v50  ;;  %1425 = vst.msk [vmem:[%s2155_s23 + $0xbc] sm:$0xf] %vm1377_vm3, %v1777_v51  ;;  %v1073_v56 = vmax.f32 %v867_v52, 0.0  ;;  %v1105_v57 = vmax.f32 %v995_v53, 0.0 }
 0x139   : > { %v869_v58 = vpop.f32.mrf.mxu0  ;;  %v997_v59 = vpop.f32.mrf.mxu1 }
 0x13a   : > { %v1746_v60 = vpack.c.bf16 %v1073_v56, %v1073_v56  ;;  %v1778_v61 = vpack.c.bf16 %v1105_v57, %v1105_v57  ;;  %v870_v62 = vadd.f32 %v2147_v15, %v869_v58  ;;  %v998_v63 = vadd.f32 %v2147_v15, %v997_v59 }
 0x13b   : > { %v871_v0 = vpop.f32.mrf.mxu0  ;;  %v999_v1 = vpop.f32.mrf.mxu1 }
 0x13c   : > { %1394 = vst.msk [vmem:[%s2155_s23 + $0x40] sm:$0xf] %vm1377_vm3, %v1746_v60  ;;  %1426 = vst.msk [vmem:[%s2155_s23 + $0xc0] sm:$0xf] %vm1377_vm3, %v1778_v61  ;;  %v1074_v2 = vmax.f32 %v870_v62, 0.0  ;;  %v1106_v3 = vmax.f32 %v998_v63, 0.0 }
 0x13d   : > { %v874_v4 = vpop.f32.mrf.mxu0  ;;  %v1002_v5 = vpop.f32.mrf.mxu1 }
 0x13e   : > { %v1747_v6 = vpack.c.bf16 %v1074_v2, %v1074_v2  ;;  %v1779_v7 = vpack.c.bf16 %v1106_v3, %v1106_v3  ;;  %v875_v8 = vadd.f32 %v2147_v15, %v874_v4  ;;  %v1003_v9 = vadd.f32 %v2147_v15, %v1002_v5 }
 0x13f   : > { %v876_v10 = vpop.f32.mrf.mxu0  ;;  %v1004_v11 = vpop.f32.mrf.mxu1 }
 0x140   : > { %1395 = vst.msk [vmem:[%s2155_s23 + $0x44] sm:$0xf] %vm1377_vm3, %v1747_v6  ;;  %1427 = vst.msk [vmem:[%s2155_s23 + $0xc4] sm:$0xf] %vm1377_vm3, %v1779_v7  ;;  %v1075_v12 = vmax.f32 %v875_v8, 0.0  ;;  %v1107_v13 = vmax.f32 %v1003_v9, 0.0 }
 0x141   : > { %v877_v14 = vpop.f32.mrf.mxu0  ;;  %v1005_v16 = vpop.f32.mrf.mxu1 }
 0x142   : > { %v1748_v17 = vpack.c.bf16 %v1075_v12, %v1075_v12  ;;  %v1780_v18 = vpack.c.bf16 %v1107_v13, %v1107_v13  ;;  %v878_v19 = vadd.f32 %v2147_v15, %v877_v14  ;;  %v1006_v20 = vadd.f32 %v2147_v15, %v1005_v16 }
 0x143   : > { %v879_v21 = vpop.f32.mrf.mxu0  ;;  %v1007_v22 = vpop.f32.mrf.mxu1 }
 0x144   : > { %1396 = vst.msk [vmem:[%s2155_s23 + $0x48] sm:$0xf] %vm1377_vm3, %v1748_v17  ;;  %1428 = vst.msk [vmem:[%s2155_s23 + $0xc8] sm:$0xf] %vm1377_vm3, %v1780_v18  ;;  %v1076_v23 = vmax.f32 %v878_v19, 0.0  ;;  %v1108_v24 = vmax.f32 %v1006_v20, 0.0 }
 0x145   : > { %v882_v25 = vpop.f32.mrf.mxu0  ;;  %v1010_v26 = vpop.f32.mrf.mxu1 }
 0x146   : > { %v1749_v27 = vpack.c.bf16 %v1076_v23, %v1076_v23  ;;  %v1781_v28 = vpack.c.bf16 %v1108_v24, %v1108_v24  ;;  %v883_v29 = vadd.f32 %v2147_v15, %v882_v25  ;;  %v1011_v30 = vadd.f32 %v2147_v15, %v1010_v26 }
 0x147   : > { %v884_v31 = vpop.f32.mrf.mxu0  ;;  %v1012_v32 = vpop.f32.mrf.mxu1 }
 0x148   : > { %1397 = vst.msk [vmem:[%s2155_s23 + $0x4c] sm:$0xf] %vm1377_vm3, %v1749_v27  ;;  %1429 = vst.msk [vmem:[%s2155_s23 + $0xcc] sm:$0xf] %vm1377_vm3, %v1781_v28  ;;  %v1077_v33 = vmax.f32 %v883_v29, 0.0  ;;  %v1109_v34 = vmax.f32 %v1011_v30, 0.0 }
 0x149   : > { %v885_v35 = vpop.f32.mrf.mxu0  ;;  %v1013_v36 = vpop.f32.mrf.mxu1 }
 0x14a   : > { %v1750_v37 = vpack.c.bf16 %v1077_v33, %v1077_v33  ;;  %v1782_v38 = vpack.c.bf16 %v1109_v34, %v1109_v34  ;;  %v886_v39 = vadd.f32 %v2147_v15, %v885_v35  ;;  %v1014_v40 = vadd.f32 %v2147_v15, %v1013_v36 }
 0x14b   : > { %v887_v41 = vpop.f32.mrf.mxu0  ;;  %v1015_v42 = vpop.f32.mrf.mxu1 }
 0x14c   : > { %1398 = vst.msk [vmem:[%s2155_s23 + $0x50] sm:$0xf] %vm1377_vm3, %v1750_v37  ;;  %1430 = vst.msk [vmem:[%s2155_s23 + $0xd0] sm:$0xf] %vm1377_vm3, %v1782_v38  ;;  %v1078_v43 = vmax.f32 %v886_v39, 0.0  ;;  %v1110_v44 = vmax.f32 %v1014_v40, 0.0 }
 0x14d   : > { %v890_v45 = vpop.f32.mrf.mxu0  ;;  %v1018_v46 = vpop.f32.mrf.mxu1 }
 0x14e   : > { %v1751_v47 = vpack.c.bf16 %v1078_v43, %v1078_v43  ;;  %v1783_v48 = vpack.c.bf16 %v1110_v44, %v1110_v44  ;;  %v891_v49 = vadd.f32 %v2147_v15, %v890_v45  ;;  %v1019_v50 = vadd.f32 %v2147_v15, %v1018_v46 }
 0x14f   : > { %v892_v51 = vpop.f32.mrf.mxu0  ;;  %v1020_v52 = vpop.f32.mrf.mxu1 }
 0x150   : > { %1399 = vst.msk [vmem:[%s2155_s23 + $0x54] sm:$0xf] %vm1377_vm3, %v1751_v47  ;;  %1431 = vst.msk [vmem:[%s2155_s23 + $0xd4] sm:$0xf] %vm1377_vm3, %v1783_v48  ;;  %v1079_v53 = vmax.f32 %v891_v49, 0.0  ;;  %v1111_v54 = vmax.f32 %v1019_v50, 0.0 }
 0x151   : > { %v893_v55 = vpop.f32.mrf.mxu0  ;;  %v1021_v56 = vpop.f32.mrf.mxu1 }
 0x152   : > { %v1752_v57 = vpack.c.bf16 %v1079_v53, %v1079_v53  ;;  %v1784_v58 = vpack.c.bf16 %v1111_v54, %v1111_v54  ;;  %v894_v59 = vadd.f32 %v2147_v15, %v893_v55  ;;  %v1022_v60 = vadd.f32 %v2147_v15, %v1021_v56 }
 0x153   : > { %v895_v61 = vpop.f32.mrf.mxu0  ;;  %v1023_v62 = vpop.f32.mrf.mxu1 }
 0x154   : > { %1400 = vst.msk [vmem:[%s2155_s23 + $0x58] sm:$0xf] %vm1377_vm3, %v1752_v57  ;;  %1432 = vst.msk [vmem:[%s2155_s23 + $0xd8] sm:$0xf] %vm1377_vm3, %v1784_v58  ;;  %v1080_v63 = vmax.f32 %v894_v59, 0.0  ;;  %v1112_v0 = vmax.f32 %v1022_v60, 0.0 }
 0x155   : > { %v898_v1 = vpop.f32.mrf.mxu0  ;;  %v1026_v2 = vpop.f32.mrf.mxu1 }
 0x156   : > { %v1753_v3 = vpack.c.bf16 %v1080_v63, %v1080_v63  ;;  %v1785_v4 = vpack.c.bf16 %v1112_v0, %v1112_v0  ;;  %v899_v5 = vadd.f32 %v2147_v15, %v898_v1  ;;  %v1027_v6 = vadd.f32 %v2147_v15, %v1026_v2 }
 0x157   : > { %v900_v7 = vpop.f32.mrf.mxu0  ;;  %v1028_v8 = vpop.f32.mrf.mxu1 }
 0x158   : > { %1401 = vst.msk [vmem:[%s2155_s23 + $0x5c] sm:$0xf] %vm1377_vm3, %v1753_v3  ;;  %1433 = vst.msk [vmem:[%s2155_s23 + $0xdc] sm:$0xf] %vm1377_vm3, %v1785_v4  ;;  %v1081_v9 = vmax.f32 %v899_v5, 0.0  ;;  %v1113_v10 = vmax.f32 %v1027_v6, 0.0 }
 0x159   : > { %v901_v11 = vpop.f32.mrf.mxu0  ;;  %v1029_v12 = vpop.f32.mrf.mxu1 }
 0x15a   : > { %v1754_v13 = vpack.c.bf16 %v1081_v9, %v1081_v9  ;;  %v1786_v14 = vpack.c.bf16 %v1113_v10, %v1113_v10  ;;  %v902_v16 = vadd.f32 %v2147_v15, %v901_v11  ;;  %v1030_v17 = vadd.f32 %v2147_v15, %v1029_v12 }
 0x15b   : > { %v903_v18 = vpop.f32.mrf.mxu0  ;;  %v1031_v19 = vpop.f32.mrf.mxu1 }
 0x15c   : > { %1402 = vst.msk [vmem:[%s2155_s23 + $0x60] sm:$0xf] %vm1377_vm3, %v1754_v13  ;;  %1434 = vst.msk [vmem:[%s2155_s23 + $0xe0] sm:$0xf] %vm1377_vm3, %v1786_v14  ;;  %v1082_v20 = vmax.f32 %v902_v16, 0.0  ;;  %v1114_v21 = vmax.f32 %v1030_v17, 0.0 }
 0x15d   : > { %v906_v22 = vpop.f32.mrf.mxu0  ;;  %v1034_v23 = vpop.f32.mrf.mxu1 }
 0x15e   : > { %v1755_v24 = vpack.c.bf16 %v1082_v20, %v1082_v20  ;;  %v1787_v25 = vpack.c.bf16 %v1114_v21, %v1114_v21  ;;  %v907_v26 = vadd.f32 %v2147_v15, %v906_v22  ;;  %v1035_v27 = vadd.f32 %v2147_v15, %v1034_v23 }
 0x15f   : > { %v908_v28 = vpop.f32.mrf.mxu0  ;;  %v1036_v29 = vpop.f32.mrf.mxu1 }
 0x160   : > { %1403 = vst.msk [vmem:[%s2155_s23 + $0x64] sm:$0xf] %vm1377_vm3, %v1755_v24  ;;  %1435 = vst.msk [vmem:[%s2155_s23 + $0xe4] sm:$0xf] %vm1377_vm3, %v1787_v25  ;;  %v1083_v30 = vmax.f32 %v907_v26, 0.0  ;;  %v1115_v31 = vmax.f32 %v1035_v27, 0.0 }
 0x161   : > { %v909_v32 = vpop.f32.mrf.mxu0  ;;  %v1037_v33 = vpop.f32.mrf.mxu1 }
 0x162   : > { %v1756_v34 = vpack.c.bf16 %v1083_v30, %v1083_v30  ;;  %v1788_v35 = vpack.c.bf16 %v1115_v31, %v1115_v31  ;;  %v910_v36 = vadd.f32 %v2147_v15, %v909_v32  ;;  %v1038_v37 = vadd.f32 %v2147_v15, %v1037_v33 }
 0x163   : > { %v911_v38 = vpop.f32.mrf.mxu0  ;;  %v1039_v39 = vpop.f32.mrf.mxu1 }
 0x164   : > { %1404 = vst.msk [vmem:[%s2155_s23 + $0x68] sm:$0xf] %vm1377_vm3, %v1756_v34  ;;  %1436 = vst.msk [vmem:[%s2155_s23 + $0xe8] sm:$0xf] %vm1377_vm3, %v1788_v35  ;;  %v1084_v40 = vmax.f32 %v910_v36, 0.0  ;;  %v1116_v41 = vmax.f32 %v1038_v37, 0.0 }
 0x165   : > { %v914_v42 = vpop.f32.mrf.mxu0  ;;  %v1042_v43 = vpop.f32.mrf.mxu1 }
 0x166   : > { %v1757_v44 = vpack.c.bf16 %v1084_v40, %v1084_v40  ;;  %v1789_v45 = vpack.c.bf16 %v1116_v41, %v1116_v41  ;;  %v915_v46 = vadd.f32 %v2147_v15, %v914_v42  ;;  %v1043_v47 = vadd.f32 %v2147_v15, %v1042_v43 }
 0x167   : > { %v916_v48 = vpop.f32.mrf.mxu0  ;;  %v1044_v49 = vpop.f32.mrf.mxu1 }
 0x168   : > { %1405 = vst.msk [vmem:[%s2155_s23 + $0x6c] sm:$0xf] %vm1377_vm3, %v1757_v44  ;;  %1437 = vst.msk [vmem:[%s2155_s23 + $0xec] sm:$0xf] %vm1377_vm3, %v1789_v45  ;;  %v1085_v50 = vmax.f32 %v915_v46, 0.0  ;;  %v1117_v51 = vmax.f32 %v1043_v47, 0.0 }
 0x169   : > { %v917_v52 = vpop.f32.mrf.mxu0  ;;  %v1045_v53 = vpop.f32.mrf.mxu1 }
 0x16a   : > { %v1758_v54 = vpack.c.bf16 %v1085_v50, %v1085_v50  ;;  %v1790_v55 = vpack.c.bf16 %v1117_v51, %v1117_v51  ;;  %v918_v56 = vadd.f32 %v2147_v15, %v917_v52  ;;  %v1046_v57 = vadd.f32 %v2147_v15, %v1045_v53 }
 0x16b   : > { %v919_v58 = vpop.f32.mrf.mxu0  ;;  %v1047_v59 = vpop.f32.mrf.mxu1 }
 0x16c   : > { %1406 = vst.msk [vmem:[%s2155_s23 + $0x70] sm:$0xf] %vm1377_vm3, %v1758_v54  ;;  %1438 = vst.msk [vmem:[%s2155_s23 + $0xf0] sm:$0xf] %vm1377_vm3, %v1790_v55  ;;  %v1086_v60 = vmax.f32 %v918_v56, 0.0  ;;  %v1118_v61 = vmax.f32 %v1046_v57, 0.0 }
 0x16d   : > { %v922_v62 = vpop.f32.mrf.mxu0  ;;  %v1050_v63 = vpop.f32.mrf.mxu1 }
 0x16e   : > { %v1759_v0 = vpack.c.bf16 %v1086_v60, %v1086_v60  ;;  %v1791_v1 = vpack.c.bf16 %v1118_v61, %v1118_v61  ;;  %v923_v2 = vadd.f32 %v2147_v15, %v922_v62  ;;  %v1051_v3 = vadd.f32 %v2147_v15, %v1050_v63 }
 0x16f   : > { %v924_v4 = vpop.f32.mrf.mxu0  ;;  %v1052_v5 = vpop.f32.mrf.mxu1 }
 0x170   : > { %1407 = vst.msk [vmem:[%s2155_s23 + $0x74] sm:$0xf] %vm1377_vm3, %v1759_v0  ;;  %1439 = vst.msk [vmem:[%s2155_s23 + $0xf4] sm:$0xf] %vm1377_vm3, %v1791_v1  ;;  %v1087_v6 = vmax.f32 %v923_v2, 0.0  ;;  %v1119_v7 = vmax.f32 %v1051_v3, 0.0 }
 0x171   : > { %v925_v8 = vpop.f32.mrf.mxu0  ;;  %v1053_v9 = vpop.f32.mrf.mxu1 }
 0x172   : > { %v1760_v10 = vpack.c.bf16 %v1087_v6, %v1087_v6  ;;  %v1792_v11 = vpack.c.bf16 %v1119_v7, %v1119_v7  ;;  %v926_v12 = vadd.f32 %v2147_v15, %v925_v8  ;;  %v1054_v13 = vadd.f32 %v2147_v15, %v1053_v9 }
 0x173   : > { %v927_v14 = vpop.f32.mrf.mxu0  ;;  %v1055_v16 = vpop.f32.mrf.mxu1 }
 0x174   : > { %1408 = vst.msk [vmem:[%s2155_s23 + $0x78] sm:$0xf] %vm1377_vm3, %v1760_v10  ;;  %1440 = vst.msk [vmem:[%s2155_s23 + $0xf8] sm:$0xf] %vm1377_vm3, %v1792_v11  ;;  %v1088_v17 = vmax.f32 %v926_v12, 0.0  ;;  %v1120_v18 = vmax.f32 %v1054_v13, 0.0 }
 0x176   : > { %v1761_v19 = vpack.c.bf16 %v1088_v17, %v1088_v17  ;;  %v1793_v20 = vpack.c.bf16 %v1120_v18, %v1120_v18 }
 0x178   : > { %1409 = vst.msk [vmem:[%s2155_s23 + $0x7c] sm:$0xf] %vm1377_vm3, %v1761_v19  ;;  %1441 = vst.msk [vmem:[%s2155_s23 + $0xfc] sm:$0xf] %vm1377_vm3, %v1793_v20 }
 0x179 PF: > { %s13_s14 = sadd.s32 1, %s1968_s14   ;;  %s2360_s12 = smov %s1964_s13 }
 0x17a   : > { %p10_p5 = scmp.ge.s32.totalorder %s13_s14, 6   ;;  %s2361_s13 = smov %s2363_s15 }
 0x17c   :  { %12 = sbr.rel (!%p10_p5) target bundleno = 2 (0x2), region = 68 }

</bundles_post_ra>
